<compile_context>
chip_gen: v7x
topology: tpu7x:2x2x1
jax: 0.10.0
libtpu: 0.0.40
codegen_flags: <defaults>
</compile_context>

<pallas_src>
import jax
import jax.numpy as jnp
from jax.experimental import pallas as pl
from jax.experimental.pallas import tpu as pltpu


# --------------------------------------------------------------------------
# Pallas kernel
# --------------------------------------------------------------------------
def _h_swish_kernel(x_ref, o_ref):
    x = x_ref[...]
    # relu6(x + 3) / 6  ==  clip(x + 3, 0, 6) * (1/6)
    o_ref[...] = x * (jnp.clip(x + 3.0, 0.0, 6.0) * (1.0 / 6.0))


# --------------------------------------------------------------------------
# Wrapper
# --------------------------------------------------------------------------
_LANE = 128          # lane width of a vreg (last dim, must be 128-dense)
_MAX_TILE_ROWS = 1024  # 1024 x 128 f32 = 512 KiB per buffer (in+out, 2x buffered ~2 MiB)


def h_swish(x):
    """Elementwise x * relu6(x + 3) / 6 on TPU via Pallas. Any shape/dtype."""
    orig_shape = x.shape
    orig_dtype = x.dtype

    flat = x.reshape(-1)
    n = flat.shape[0]

    # Lane-dense 2D slab: (rows, 128), rows padded to a multiple of the tile.
    rows = pl.cdiv(n, _LANE)
    rows_8 = max(8, ((rows + 7) // 8) * 8)          # sublane multiple of 8
    tile_rows = min(_MAX_TILE_ROWS, rows_8)
    rows_pad = pl.cdiv(rows_8, tile_rows) * tile_rows
    n_pad = rows_pad * _LANE

    if n_pad != n:
        flat = jnp.pad(flat, (0, n_pad - n))
    x2 = flat.reshape(rows_pad, _LANE)

    grid = (rows_pad // tile_rows,)
    out2 = pl.pallas_call(
        _h_swish_kernel,
        out_shape=jax.ShapeDtypeStruct((rows_pad, _LANE), x2.dtype),
        grid=grid,
        in_specs=[pl.BlockSpec((tile_rows, _LANE), lambda i: (i, 0))],
        out_specs=pl.BlockSpec((tile_rows, _LANE), lambda i: (i, 0)),
        compiler_params=pltpu.CompilerParams(
            dimension_semantics=("parallel",),
            vmem_limit_bytes=16 * 1024 * 1024,
        ),
    )(x2)

    return out2.reshape(-1)[:n].reshape(orig_shape).astype(orig_dtype)


def _h_swish_ref(x):
    return x * jnp.clip(x + 3.0, 0.0, 6.0) / 6.0


# --------------------------------------------------------------------------
if __name__ == "__main__":
    key = jax.random.PRNGKey(0)

    # Small shape consistent with typical module usage.
    k1, k2 = jax.random.split(key)
    x_small = 4.0 * jax.random.normal(k1, (2, 4, 16, 16), jnp.float32)
    # Larger slab to exercise a multi-step parallel grid.
    x_large = 4.0 * jax.random.normal(k2, (2, 64, 32, 32), jnp.float32)

    fwd = jax.jit(h_swish)

    ok = True
    for x in (x_small, x_large):
        y = jax.block_until_ready(fwd(x))
        y_ref = _h_swish_ref(x)
        assert y.shape == x.shape, (y.shape, x.shape)
        assert bool(jnp.all(jnp.isfinite(y)))
        err = float(jnp.max(jnp.abs(y - y_ref)))
        ok = ok and (err < 1e-5)

    if ok:
        print("KERNEL_OK")
</pallas_src>

<mosaic_0001>
module attributes {stable_mosaic.version = 11 : i64} {
  func.func @_h_swish_kernel(%arg0: i32, %arg1: memref<16x128xf32, #tpu.memory_space<vmem>>, %arg2: memref<16x128xf32, #tpu.memory_space<vmem>>) attributes {dimension_semantics = [#tpu.dimension_semantics<parallel>], iteration_bounds = array<i64: 1>, scalar_prefetch = 0 : i64, scratch_operands = 0 : i64, tpu.core_type = #tpu.core_type<tc>, window_params = [{transform_indices = @transform_0, window_bounds = array<i64: 16, 128>}, {transform_indices = @transform_1, window_bounds = array<i64: 16, 128>}]} {
    %c0 = arith.constant 0 : index
    %c0_0 = arith.constant 0 : index
    %0 = vector.load %arg1[%c0, %c0_0] : memref<16x128xf32, #tpu.memory_space<vmem>>, vector<16x128xf32>
    %cst = arith.constant 3.000000e+00 : f32
    %1 = vector.broadcast %cst : f32 to vector<16x128xf32>
    %2 = arith.addf %0, %1 : vector<16x128xf32>
    %cst_1 = arith.constant 0.000000e+00 : f32
    %cst_2 = arith.constant 6.000000e+00 : f32
    %3 = vector.broadcast %cst_1 : f32 to vector<16x128xf32>
    %4 = arith.maximumf %3, %2 : vector<16x128xf32>
    %5 = vector.broadcast %cst_2 : f32 to vector<16x128xf32>
    %6 = arith.minimumf %5, %4 : vector<16x128xf32>
    %cst_3 = arith.constant 0.166666672 : f32
    %7 = vector.broadcast %cst_3 : f32 to vector<16x128xf32>
    %8 = arith.mulf %6, %7 : vector<16x128xf32>
    %9 = arith.mulf %0, %8 : vector<16x128xf32>
    %c0_4 = arith.constant 0 : index
    %c0_5 = arith.constant 0 : index
    %10 = vector.load %arg2[%c0_4, %c0_5] : memref<16x128xf32, #tpu.memory_space<vmem>>, vector<16x128xf32>
    tpu.vector_store %arg2[%c0_4, %c0_5], %9 {strides = array<i32>} : memref<16x128xf32, #tpu.memory_space<vmem>>, vector<16x128xf32>,
    return
  }
  func.func @transform_0(%arg0: i32) -> (i32, i32) {
    %c0_i32 = arith.constant 0 : i32
    %c0_i32_0 = arith.constant 0 : i32
    return %arg0, %c0_i32 : i32, i32
  }
  func.func @transform_1(%arg0: i32) -> (i32, i32) {
    %c0_i32 = arith.constant 0 : i32
    %c0_i32_0 = arith.constant 0 : i32
    return %arg0, %c0_i32 : i32, i32
  }
}

</mosaic_0001>

<bundles_post_ra>
// kernel: h_swish.1
= control target key start
LH: loop header
LB: loop body
LE: loop exit
PB: predicated region body
PF: predicated region fallthrough
CT: control target
= control target key end

     0   :  { %s48_s0 = inlined_call_operand.vmem [shape: f32[16,128], index: 0, kind: input, shape index: {}]   ;;  %s49_s1 = inlined_call_operand.vmem [shape: f32[16,128], index: 1, kind: output, shape index: {}]  }
   0x1   :  { %v8_v0 = vld [vmem:[%s48_s0] sm:$0xff]  ;;  %v9_v1 = vld [vmem:[%s48_s0 + $0x8] sm:$0xff] }
   0x2   :  { %v10_v2 = vadd.f32 3.0, %v8_v0  ;;  %v11_v3 = vadd.f32 3.0, %v9_v1 }
   0x4   :  { %v12_v4 = vmax.f32 %v10_v2, 0.0  ;;  %v13_v5 = vmax.f32 %v11_v3, 0.0 }
   0x6   :  { %v14_v6 = vmin.f32 %v12_v4, 6.0  ;;  %v15_v7 = vmin.f32 %v13_v5, 6.0 }
   0x8   :  { %v16_v8 = vmul.f32 0.16666667, %v14_v6  ;;  %v17_v9 = vmul.f32 0.16666667, %v15_v7 }
   0xa   :  { %v18_v10 = vmul.f32 %v16_v8, %v8_v0  ;;  %v19_v11 = vmul.f32 %v17_v9, %v9_v1 }
   0xc   :  { %20 = vst [vmem:[%s49_s1] sm:$0xff] %v18_v10  ;;  %21 = vst [vmem:[%s49_s1 + $0x8] sm:$0xff] %v19_v11 }

</bundles_post_ra>
